<compile_context>
chip_gen: v6e
topology: v6e:2x2x1
jax: 0.10.0
libtpu: 0.0.40
codegen_flags: <defaults>
</compile_context>

<pallas_src>
import numpy as np
import jax
import jax.numpy as jnp
from jax.experimental import pallas as pl
from jax.experimental.pallas import tpu as pltpu


def cnn_kernel(x_ref, w_ref, o_ref):
    # Static layout of the packed weight operand (all Python ints at trace
    # time, so every slice below is a free static view).
    D = x_ref.shape[1]
    r1 = ((D + 7) // 8) * 8              # sublane-aligned row of the bias
    wt = w_ref[0:D, :]                   # (D, Npad)   Toeplitz conv-as-matmul
    bt = w_ref[r1:r1 + 1, :]             # (1, Npad)   per-column conv bias
    fw = w_ref[r1 + 8:r1 + 9, :]         # (1, Npad)   fc weights (+ fb_eff col)

    # conv (the single real data column w==2) as ONE MXU matmul + bias + ReLU
    z = jnp.dot(x_ref[...], wt, preferred_element_type=jnp.float32) + bt
    a = jnp.maximum(z, 0.0)
    # fc: VPU multiply + XLU lane reduce (rides the otherwise-idle XLU slot).
    # Folded fb_eff column and zero-padded columns fall out here.
    o_ref[...] = jnp.sum(a * fw, axis=-1, keepdims=True)            # (B, 1)


def make_cnn_forward(conv_w, conv_b, fc_w, fc_b):
    """One-time glue: rearrange weights (numpy), return a jitted forward(x)."""
    conv_w = np.asarray(conv_w, np.float32)
    conv_b = np.asarray(conv_b, np.float32)
    fc_w = np.asarray(fc_w, np.float32)
    fc_b = np.asarray(fc_b, np.float32)

    C, _, KH, _ = conv_w.shape                     # (32, 1, 3, 1)
    W_out = 5
    H_out = fc_w.shape[1] // (C * W_out)           # = D + 2
    D = H_out - 2
    N = H_out * C
    Npad = ((N + 1 + 127) // 128) * 128            # lane-pad, keep >=1 spare col
    assert Npad > N, "fb_eff fold needs a spare padded column"

    R1 = ((D + 7) // 8) * 8                        # bias row (sublane aligned)
    R_TOTAL = R1 + 16                              # bias row-group + fc row-group

    cw = conv_w.reshape(C, KH)                     # (32, 3)

    # Packed constant operand: rows [0:D] = Toeplitz weight over the REAL
    # input rows only (columns h-major / channel-minor), row R1 = conv bias,
    # row R1+8 = fc weights for the data column (same column order).
    packed = np.zeros((R_TOTAL, Npad), np.float32)
    for h in range(H_out):
        for k in range(KH):
            d = h + k - 2                          # H padding of 2
            if 0 <= d < D:
                packed[d, h * C:(h + 1) * C] = cw[:, k]

    packed[R1, :N] = np.tile(conv_b, H_out)        # conv bias, lane-padded

    fw_full = fc_w.reshape(C, H_out, W_out)        # PyTorch flatten order
    packed[R1 + 8, :N] = fw_full[:, :, 2].T.reshape(-1)   # (H_out, C) flattened

    # constant term: fc bias + pad-column contribution, folded through the
    # relu path via one spare column (bias 1.0, weight fb_eff).
    pad_sums = fw_full[:, :, [0, 1, 3, 4]].sum(axis=(1, 2))          # (C,)
    fb_eff = float(fc_b[0]) + float(np.sum(np.maximum(conv_b, 0.0) * pad_sums))
    packed[R1, N] = 1.0
    packed[R1 + 8, N] = fb_eff

    # Invariants the fb_eff fold relies on: every column past N must be zero
    # in BOTH the bias row and the fc row so relu(0)*0 contributes nothing.
    assert np.all(packed[R1, N + 1:] == 0.0)
    assert np.all(packed[R1 + 8, N + 1:] == 0.0)

    packed_j = jnp.asarray(packed)
    packed_bytes = R_TOTAL * Npad * 4
    # Only raise the scoped-VMEM limit when the resident weight slab is large
    # enough to matter (v5e default 16 MiB / v6e,v7x 32 MiB); leave headroom.
    vmem_limit = None
    if 3 * packed_bytes > 12 * 1024 * 1024:
        vmem_limit = min(packed_bytes * 4, 96 * 1024 * 1024)

    @jax.jit
    def forward(x):
        assert x.ndim == 2 and x.shape[1] == D, (
            f"expected x of shape (B, {D}), got {x.shape}")
        assert x.dtype == jnp.float32, f"expected float32 input, got {x.dtype}"
        B = x.shape[0]

        ce = pl.CostEstimate(
            flops=2 * B * D * Npad + 3 * B * Npad,
            transcendentals=0,
            bytes_accessed=(B * D + R_TOTAL * Npad + B) * 4,
        )
        out_shape = jax.ShapeDtypeStruct((B, 1), jnp.float32)

        # Batch-grid path for non-toy batches: TB multiple of 8 (unmasked
        # sublane stores), packed weights resident via constant index_map.
        tb = 0
        for cand in (256, 128, 64, 32, 16, 8):
            if B >= cand and B % cand == 0:
                tb = cand
                break

        if tb:
            return pl.pallas_call(
                cnn_kernel,
                out_shape=out_shape,
                grid=(B // tb,),
                in_specs=[
                    pl.BlockSpec((tb, D), lambda i: (i, 0)),
                    pl.BlockSpec((R_TOTAL, Npad), lambda i: (0, 0)),
                ],
                out_specs=pl.BlockSpec((tb, 1), lambda i: (i, 0)),
                compiler_params=pltpu.CompilerParams(
                    dimension_semantics=("parallel",),
                    vmem_limit_bytes=vmem_limit),
                cost_estimate=ce,
            )(x, packed_j)

        # Gridless path (e.g. B=2): single DMA burst, full-array blocks.
        return pl.pallas_call(
            cnn_kernel,
            out_shape=out_shape,
            in_specs=[pl.BlockSpec(memory_space=pltpu.MemorySpace.VMEM)] * 2,
            out_specs=pl.BlockSpec(memory_space=pltpu.MemorySpace.VMEM),
            compiler_params=pltpu.CompilerParams(vmem_limit_bytes=vmem_limit),
            cost_estimate=ce,
        )(x, packed_j)

    return forward


def reference_forward(x, conv_w, conv_b, fc_w, fc_b):
    """Pure-JAX replica of the PyTorch forward for verification."""
    B, D = x.shape
    C, _, KH, _ = conv_w.shape
    H_out, W_out = D + 2, 5
    xh = jnp.pad(x, ((0, 0), (2, 2)))                                   # H padding
    cols = jnp.stack([xh[:, k:k + H_out] for k in range(KH)], axis=-1)  # (B,H_out,3)
    cw = conv_w.reshape(C, KH)
    conv_col2 = jnp.einsum('bhk,ck->bch', cols, cw) + conv_b[None, :, None]
    full = jnp.broadcast_to(conv_b[None, :, None, None], (B, C, H_out, W_out))
    full = full.at[:, :, :, 2].set(conv_col2)                           # (B,32,H_out,5)
    act = jnp.maximum(full, 0.0).reshape(B, -1)
    return act @ fc_w.T + fc_b[None, :]


if __name__ == "__main__":
    input_dim = 16
    B = 2
    C, KH = 32, 3
    conv_out_dim = C * (input_dim + 2) * 5

    key = jax.random.PRNGKey(0)
    k1, k2, k3, k4, k5 = jax.random.split(key, 5)
    cb_bound = 1.0 / np.sqrt(1 * KH * 1)
    fc_bound = 1.0 / np.sqrt(conv_out_dim)
    conv_w = jax.random.uniform(k1, (C, 1, KH, 1), jnp.float32, -cb_bound, cb_bound)
    conv_b = jax.random.uniform(k2, (C,), jnp.float32, -cb_bound, cb_bound)
    fc_w = jax.random.uniform(k3, (1, conv_out_dim), jnp.float32, -fc_bound, fc_bound)
    fc_b = jax.random.uniform(k4, (1,), jnp.float32, -fc_bound, fc_bound)
    x = jax.random.normal(k5, (B, input_dim), jnp.float32)

    forward = make_cnn_forward(conv_w, conv_b, fc_w, fc_b)
    out = jax.block_until_ready(forward(x))

    ref = reference_forward(x, conv_w, conv_b, fc_w, fc_b)
    assert out.shape == (B, 1), out.shape
    assert jnp.allclose(out, ref, rtol=1e-5, atol=1e-5), (out, ref)
    print("KERNEL_OK")
</pallas_src>

<mosaic_0001>
module attributes {stable_mosaic.version = 11 : i64} {
  func.func @cnn_kernel(%arg0: memref<2x16xf32, #tpu.memory_space<vmem>>, %arg1: memref<32x640xf32, #tpu.memory_space<vmem>>, %arg2: memref<2x1xf32, #tpu.memory_space<vmem>>) attributes {dimension_semantics = [], scalar_prefetch = 0 : i64, scratch_operands = 0 : i64, tpu.core_type = #tpu.core_type<tc>} {
    %c0 = arith.constant 0 : index
    %c0_0 = arith.constant 0 : index
    %0 = vector.load %arg1[%c0, %c0_0] : memref<32x640xf32, #tpu.memory_space<vmem>>, vector<16x640xf32>
    %c16 = arith.constant 16 : index
    %c0_1 = arith.constant 0 : index
    %1 = vector.load %arg1[%c16, %c0_1] : memref<32x640xf32, #tpu.memory_space<vmem>>, vector<1x640xf32>
    %c24 = arith.constant 24 : index
    %c0_2 = arith.constant 0 : index
    %2 = vector.load %arg1[%c24, %c0_2] : memref<32x640xf32, #tpu.memory_space<vmem>>, vector<1x640xf32>
    %c0_3 = arith.constant 0 : index
    %c0_4 = arith.constant 0 : index
    %3 = vector.load %arg0[%c0_3, %c0_4] : memref<2x16xf32, #tpu.memory_space<vmem>>, vector<2x16xf32>
    %cst = arith.constant dense<0.000000e+00> : vector<2x640xf32>
    %4 = tpu.matmul %3, %0, %cst {dimension_numbers = #tpu.dot_dimension_numbers<[1], [0], [0], [1], [0, 0, 1, 1], [], []>} : vector<2x16xf32>, vector<16x640xf32>, vector<2x640xf32> -> vector<2x640xf32>
    %5 = vector.broadcast %1 : vector<1x640xf32> to vector<2x640xf32>
    %6 = arith.addf %4, %5 : vector<2x640xf32>
    %cst_5 = arith.constant 0.000000e+00 : f32
    %7 = vector.broadcast %cst_5 : f32 to vector<2x640xf32>
    %8 = arith.maximumf %6, %7 : vector<2x640xf32>
    %9 = vector.broadcast %2 : vector<1x640xf32> to vector<2x640xf32>
    %10 = arith.mulf %8, %9 : vector<2x640xf32>
    %cst_6 = arith.constant dense<0.000000e+00> : vector<2xf32>
    %11 = vector.multi_reduction <add>, %10, %cst_6 [1] : vector<2x640xf32> to vector<2xf32>
    %12 = vector.shape_cast %11 : vector<2xf32> to vector<2x1xf32>
    %c0_7 = arith.constant 0 : index
    %c0_8 = arith.constant 0 : index
    %13 = vector.load %arg2[%c0_7, %c0_8] : memref<2x1xf32, #tpu.memory_space<vmem>>, vector<2x1xf32>
    tpu.vector_store %arg2[%c0_7, %c0_8], %12 {strides = array<i32>} : memref<2x1xf32, #tpu.memory_space<vmem>>, vector<2x1xf32>,
    return
  }
}

</mosaic_0001>

<bundles_post_ra>
// kernel: forward.1
= control target key start
LH: loop header
LB: loop body
LE: loop exit
PB: predicated region body
PF: predicated region fallthrough
CT: control target
= control target key end

     0   :  { %7 = vsyncpa [#allocation3], 0  ;;  %s455_s0 = inlined_call_operand.hbm [shape: f32[2,16], index: 0, kind: input, shape index: {}]   ;;  %s456_s1 = inlined_call_operand.hbm [shape: f32[32,640], index: 1, kind: input, shape index: {}]   ;;  %s457_s2 = inlined_call_operand.vmem [shape: f32[2,1], index: 2, kind: output, shape index: {}]  }
   0x1   :  { %8 = vsyncpa [#allocation5], 0  ;;  %s417_s9 = smov [#allocation2]   ;;  %s418_s11 = smov [#allocation4]  }
   0x2   :  { %s15_s10 = sshll.u32 %s417_s9, 4  ;;  %s24_s12 = sshll.u32 %s418_s11, 4  ;;  %s16_s10 = int_to_ptr.vmem [resolvable:$true] %s15_s10  ;;  %s25_s12 = int_to_ptr.vmem [resolvable:$true] %s24_s12 }
   0x3   :  { %s381_s13 = scalar_lea.vmem %s16_s10, 32  ;;  %p386_p1 = scmp.lt.s32.totalorder %s16_s10, %s16_s10 }
   0x4   :  { %p382_p0 = scmp.ne.s32.totalorder %s16_s10, %s381_s13  ;;  %p387_p2 = scmp.lt.s32.totalorder %s381_s13, %s381_s13 }
   0x6   :  { %p388_p3 = por %p387_p2, %p386_p1 }
   0x8   :  { %p389_p4 = pnand %p388_p3, %p382_p0 }
   0xa   :  { %392 = shalt.err (!%p389_p4)
}
   0xb   :  { %18 = dma.hbm_to_vmem [thread:$0]  %s455_s0, 32, %s16_s10, [#allocation3]  }
   0xc   :  { %s401_s16 = scalar_lea.vmem %s25_s12, 2560  ;;  %p406_p6 = scmp.lt.s32.totalorder %s25_s12, %s25_s12 }
   0xd   :  { %p402_p5 = scmp.ne.s32.totalorder %s25_s12, %s401_s16  ;;  %p407_p7 = scmp.lt.s32.totalorder %s401_s16, %s401_s16 }
   0xf   :  { %p408_p8 = por %p407_p7, %p406_p6 }
  0x11   :  { %p409_p9 = pnand %p408_p8, %p402_p5 }
  0x13   :  { %412 = shalt.err (!%p409_p9)
}
  0x14   :  { %s419_s17 = smov 640   ;;  %s420_s18 = smov 40  }
  0x15   :  { %30 = dma.hbm_to_vmem [thread:$0]  %s456_s1, 2560, %s25_s12, [#allocation5], %s419_s17, %s419_s17, %s420_s18  }
  0x16   :  { %413 = dma.done.wait [#allocation3], 32  }
  0x17   :  { %414 = vsyncadd [#allocation3], 4294967264 }
  0x18   :  { %415 = dma.done.wait [#allocation5], 2560  }
  0x19   :  { %416 = vsyncadd [#allocation5], 4294964736  ;;  %v421_v0 = vmov 0.0   ;;  %v43_v1 = vld [vmem:[#allocation4 + $0x30] sm:$0xff]  ;;  %v42_v2 = vld [vmem:[#allocation4 + $0x28] sm:$0xff]  ;;  %vm82_vm0 = vcmask 130048   ;;  %v57_v12 = vlaneseq }
  0x1a   :  { %150 = vmatprep.mubr.f32.mxu0 %v421_v0  ;;  %221 = vmatprep.mubr.f32.mxu1 %v421_v0  ;;  %v38_v3 = vld [vmem:[#allocation4 + $0x8] sm:$0xff]  ;;  %v45_v4 = vld [vmem:[#allocation4 + $0x40] sm:$0xff]  ;;  %v44_v6 = vld [vmem:[#allocation4 + $0x38] sm:$0xff]  ;;  %vm422_vm1 = vmmov 0   ;;  %vm334_vm2 = vcmask 1041408   ;;  %vm346_vm3 = vcmask 1024  }
  0x1b   :  { %114 = vmatprep.subr.mxu0 %v43_v1  ;;  %v37_v5 = vld [vmem:[#allocation4] sm:$0xff]  ;;  %185 = vmatprep.subr.mxu1 %v45_v4  ;;  %v55_v7 = vld [vmem:[#allocation2] sm:$0x3]  ;;  %v39_v9 = vld [vmem:[#allocation4 + $0x10] sm:$0xff]  ;;  %v58_v13 = vshrl.u32 %v57_v12, 7 }
  0x1c   :  { %115 = vmatpush1.msra.mxu0 %v42_v2  ;;  %v40_v8 = vld [vmem:[#allocation4 + $0x18] sm:$0xff]  ;;  %186 = vmatpush1.msra.mxu1 %v44_v6  ;;  %v46_v10 = vld [vmem:[#allocation4 + $0x48] sm:$0xff]  ;;  %v41_v11 = vld [vmem:[#allocation4 + $0x20] sm:$0xff] }
  0x1d   :  { %116 = vmatprep.subr.mxu0 %v38_v3  ;;  %187 = vmatprep.subr.mxu1 %v40_v8  ;;  %v48_v14 = vld [vmem:[#allocation4 + $0x50] ss:$8 sm:$0xf]  ;;  %v59_v18 = vsub.s32 0, %v58_v13  ;;  %v67_v20 = vsub.s32 2, %v58_v13  ;;  %v63_v21 = vsub.s32 1, %v58_v13 }
  0x1e   :  { %117 = vmatpush1.msra.mxu0 %v37_v5  ;;  %188 = vmatpush1.msra.mxu1 %v39_v9  ;;  %v49_v15 = vld [vmem:[#allocation4 + $0x50] ss:$8 sm:$0x10]  ;;  %v53_v19 = vld [vmem:[#allocation4 + $0x78] ss:$8 sm:$0x10] }
  0x1f   :  { %354 = vmatmul.mubr.msk.f32.vlgmr.msra.gmra.mxu0 %vm82_vm0, %v55_v7  ;;  %355 = vmatmul.mubr.msk.f32.vlgmr.msra.gmra.mxu1 %vm82_vm0, %v55_v7  ;;  %v50_v16 = vor.u32 %v49_v15, %v48_v14  ;;  %v52_v17 = vld [vmem:[#allocation4 + $0x78] ss:$8 sm:$0xf]  ;;  %v71_v22 = vsub.s32 3, %v58_v13  ;;  %v75_v26 = vsub.s32 4, %v58_v13 }
  0x20   :  { %360 = vmatprep.subr.mxu0 %v421_v0  ;;  %364 = vmatprep.mubr.msk.f32.mxu0 %vm422_vm1, %v421_v0  ;;  %v54_v23 = vor.u32 %v53_v19, %v52_v17 }
  0x21   :  { %361 = vmatpush3.msra.mxu0 %v46_v10  ;;  %v60_v24 = vrot.slane %v50_v16, %v59_v18  ;;  %v68_v25 = vrot.slane %v50_v16, %v67_v20  ;;  %v64_v27 = vrot.slane %v50_v16, %v63_v21  ;;  %v72_v29 = vrot.slane %v50_v16, %v71_v22 }
  0x22   :  { %362 = vmatprep.subr.mxu0 %v421_v0  ;;  %v307_v31 = vrot.slane %v54_v23, %v59_v18  ;;  %v315_v35 = vrot.slane %v54_v23, %v67_v20  ;;  %v76_v36 = vrot.slane %v50_v16, %v75_v26  ;;  %v311_v39 = vrot.slane %v54_v23, %v63_v21 }
  0x23   :  { %363 = vmatpush3.msra.mxu0 %v41_v11  ;;  %v319_v45 = vrot.slane %v54_v23, %v71_v22  ;;  %v323_v50 = vrot.slane %v54_v23, %v75_v26 }
  0x24   :  { %365 = vmatmul.mubr.msk.f32.vlgmr.msra.gmra.mxu0 %vm82_vm0, %v55_v7 }
  0xdf   :  { %v152_v28 = vpop.f32.mrf.mxu0  ;;  %v223_v32 = vpop.f32.mrf.mxu1 }
  0xe0   :  { %v153_v30 = vadd.f32 %v152_v28, %v60_v24  ;;  %v224_v34 = vadd.f32 %v223_v32, %v68_v25 }
  0xe1   :  { %v154_v33 = vpop.f32.mrf.mxu0  ;;  %v225_v40 = vpop.f32.mrf.mxu1 }
  0xe2   :  { %v298_v37 = vmax.f32 %v153_v30, 0.0  ;;  %v155_v38 = vadd.f32 %v154_v33, %v64_v27  ;;  %v300_v41 = vmax.f32 %v224_v34, 0.0  ;;  %v226_v42 = vadd.f32 %v225_v40, %v72_v29 }
  0xe4   :  { %v329_v43 = vmul.f32 %v307_v31, %v298_v37  ;;  %v299_v44 = vmax.f32 %v155_v38, 0.0  ;;  %v294_v46 = vpop.f32.mrf.mxu0  ;;  %v331_v47 = vmul.f32 %v315_v35, %v300_v41  ;;  %v301_v48 = vmax.f32 %v226_v42, 0.0 }
  0xe5   :  { %v295_v49 = vadd.f32 %v294_v46, %v76_v36 }
  0xe6   :  { %v330_v51 = vmul.f32 %v311_v39, %v299_v44  ;;  %v366_v52 = vpop.f32.mrf.mxu0  ;;  %v335_v54 = vsel %vm334_vm2, %v329_v43, 0.0  ;;  %v332_v56 = vmul.f32 %v319_v45, %v301_v48  ;;  %v338_v57 = vsel %vm334_vm2, %v331_v47, 0.0 }
  0xe7   :  { %v302_v53 = vmax.f32 %v295_v49, 0.0 }
  0xe8   :  { %v336_v55 = vsel %vm334_vm2, %v330_v51, 0.0  ;;  %v340_v61 = vsel %vm334_vm2, %v332_v56, 0.0 }
  0xe9   :  { %v333_v58 = vmul.f32 %v323_v50, %v302_v53  ;;  %v337_v59 = vadd.f32 %v336_v55, %v335_v54 }
  0xeb   :  { %v339_v60 = vadd.f32 %v338_v57, %v337_v59  ;;  %v342_v62 = vsel %vm334_vm2, %v333_v58, 0.0 }
  0xed   :  { %v341_v63 = vadd.f32 %v340_v61, %v339_v60 }
  0xef   :  { %v343_v0 = vadd.f32 %v342_v62, %v341_v63 }
  0xf1   :  { %344 = vadd.xlane.f32.xlu0 %v343_v0 }
 0x17a   :  { %v345_v1 = vpop.xlane.xlu0 %344 }
 0x17b   :  { %347 = vst.msk [vmem:[%s457_s2] sm:$0x3] %vm346_vm3, %v345_v1 }
 0x17c   :  { %352 = vsyncpa [#allocation3], 1 }
 0x17d   :  { %353 = vsyncpa [#allocation5], 1 }

</bundles_post_ra>
